<compile_context>
chip_gen: v7x
topology: tpu7x:2x2x1
jax: 0.10.0
libtpu: 0.0.40
codegen_flags: <defaults>
</compile_context>

<pallas_src>
import numpy as np
import jax
import jax.numpy as jnp
from jax.experimental import pallas as pl
from jax.experimental.pallas import tpu as pltpu

_NBUF = 8  # per-row DMA slots kept in flight (power of two)


def _make_gather_kernel(rows_per_block, nbuf):
    """Kernel for one output block of `rows_per_block` rows.

    idx_ref:    SMEM (n_pad,)      int32 source-row indices (scalar prefetch)
    contig_ref: SMEM (n_blocks,)   int32, 1 iff this block's sources are a
                                   contiguous run in x (single large DMA)
    x_hbm:      (R, D) raw HBM ref (memory_space=pl.ANY)
    o_ref:      (rows_per_block, D) VMEM output block (DMA'd into directly)
    sem:        DMA semaphores (nbuf,)
    """

    def kernel(idx_ref, contig_ref, x_hbm, o_ref, sem):
        b = pl.program_id(0)
        base = b * rows_per_block

        @pl.when(contig_ref[b] != 0)
        def _contiguous():
            # Whole block is one contiguous run in the source: single DMA.
            cp = pltpu.make_async_copy(
                x_hbm.at[pl.ds(idx_ref[base], rows_per_block)], o_ref, sem.at[0])
            cp.start()
            cp.wait()

        @pl.when(contig_ref[b] == 0)
        def _scattered():
            depth = min(nbuf, rows_per_block)

            def dma(r):
                # DMA straight from the gathered HBM row into output row r
                # (no staging buffer, no vreg load/store).
                return pltpu.make_async_copy(
                    x_hbm.at[pl.ds(idx_ref[base + r], 1)],
                    o_ref.at[pl.ds(r, 1)],
                    sem.at[r & (nbuf - 1)])

            @pl.loop(0, depth)
            def _prime(r):
                dma(r).start()

            @pl.loop(0, rows_per_block)
            def _drain(r):
                dma(r).wait()

                @pl.when(r + depth < rows_per_block)
                def _():
                    dma(r + depth).start()

    return kernel


def _grouping_metadata(groupby_np, num_per_group):
    """Host-side mirror of the torch metadata logic.  Returns
    (idx_sorted (N,), groups (G,), example_ids (G,)) as numpy int32."""
    groupby_np = np.asarray(groupby_np)
    B, S = groupby_np.shape
    ex = np.repeat(np.arange(B, dtype=np.int64), S)
    lab = groupby_np.reshape(-1).astype(np.int64)
    idx = np.arange(B * S, dtype=np.int64)

    keep = lab >= 0
    ex, lab, idx = ex[keep], lab[keep], idx[keep]
    if ex.size == 0:
        raise ValueError(
            'Expected exactly {} per unique groupby. min count: 0, max count: 0'
            .format(num_per_group))

    # torch.unique(..., sorted=True, dim=0): all rows unique (idx is unique),
    # so this is a lexicographic sort by (example_id, group_label, flat_index).
    order = np.lexsort((idx, lab, ex))
    ex, lab, idx = ex[order], lab[order], idx[order]

    # torch.unique_consecutive(groups[:, :2], return_counts=True, dim=0)
    change = np.ones(ex.size, dtype=bool)
    change[1:] = (ex[1:] != ex[:-1]) | (lab[1:] != lab[:-1])
    starts = np.flatnonzero(change)
    counts = np.diff(np.append(starts, ex.size))
    if counts.min() != num_per_group or counts.max() != num_per_group:
        raise ValueError(
            'Expected exactly {} per unique groupby. min count: {}, max count: {}'
            .format(num_per_group, int(counts.min()), int(counts.max())))

    P = int(num_per_group)
    G = ex.size // P
    groups = lab.reshape(G, P)[:, 0].astype(np.int32)
    example_ids = ex.reshape(G, P)[:, 0].astype(np.int32)
    return idx.astype(np.int32), groups, example_ids


def _plan_gather(idx_sorted, max_rows_per_block):
    """Choose rows_per_block, pad the index list to a whole number of blocks,
    and mark blocks whose source rows form a contiguous run (1 DMA / block)."""
    n = int(idx_sorted.shape[0])
    cap = max(int(max_rows_per_block), 1)
    if n <= cap:
        rt = n                                   # single block == full output
    else:
        cap8 = max(8, cap - cap % 8)
        rt = 0
        for cand in range(cap8, 7, -8):          # divisor of n, multiple of 8
            if n % cand == 0:
                rt = cand
                break
        if rt == 0:
            rt = cap8                            # non-dividing: pad + slice
    n_blocks = -(-n // rt)
    n_pad = n_blocks * rt

    idx_pad = np.empty((n_pad,), np.int32)
    idx_pad[:n] = idx_sorted
    idx_pad[n:] = idx_sorted[-1]                 # safe in-bounds padding rows

    blocks = idx_pad.reshape(n_blocks, rt)
    contig = (blocks == blocks[:, :1] + np.arange(rt, dtype=np.int32)).all(axis=1)
    return rt, idx_pad, contig.astype(np.int32)


def _gather_rows(x_flat, idx_pad, contig, rows_per_block, nbuf=_NBUF):
    """x_flat: (R, D); idx_pad: (n_pad,) int32 source rows in sorted group
    order (padded to a multiple of rows_per_block); contig: (n_blocks,) flags.
    Returns (n_pad, D) gathered rows."""
    R, D = int(x_flat.shape[0]), int(x_flat.shape[1])
    n_pad = int(idx_pad.shape[0])
    n_blocks = int(contig.shape[0])

    return pl.pallas_call(
        _make_gather_kernel(rows_per_block, nbuf),
        out_shape=jax.ShapeDtypeStruct((n_pad, D), x_flat.dtype),
        grid_spec=pltpu.PrefetchScalarGridSpec(
            num_scalar_prefetch=2,
            grid=(n_blocks,),
            in_specs=[
                # Raw HBM ref; all HBM->VMEM movement is manual DMA.
                pl.BlockSpec(memory_space=pl.ANY),
            ],
            # One dense (rows_per_block, D) writeback per block.  Typical
            # hidden sizes (768/1024) keep the lane axis dense; D < 128 will
            # fall back to masked partial stores on writeback.
            out_specs=pl.BlockSpec((rows_per_block, D),
                                   lambda b, idx, contig: (b, 0)),
            scratch_shapes=[pltpu.SemaphoreType.DMA((nbuf,))],
        ),
        compiler_params=pltpu.CompilerParams(
            dimension_semantics=("parallel",)),
    )(idx_pad, contig, x_flat)


def precompute_group_metadata(groupby, num_per_group, *, max_rows_per_block=512):
    """Host-side grouping metadata.  Call this ahead of the step (groupby is
    known before x) so the device->host sync and numpy work are off the
    critical path; the gather-plan arrays are uploaded asynchronously."""
    gb = np.asarray(jax.device_get(groupby))
    idx_sorted, groups, example_ids = _grouping_metadata(gb, num_per_group)
    rows_per_block, idx_pad, contig = _plan_gather(idx_sorted, max_rows_per_block)
    return dict(
        num_rows=int(idx_sorted.shape[0]),
        num_groups=int(groups.shape[0]),
        num_per_group=int(num_per_group),
        rows_per_block=int(rows_per_block),
        idx_pad=jax.device_put(idx_pad),
        contig=jax.device_put(contig),
        groups=jax.device_put(groups),
        example_ids=jax.device_put(example_ids),
    )


def group_concat(x, groupby=None, num_per_group=None, *, metadata=None,
                 max_rows_per_block=512):
    """Pallas-backed GroupConcat.forward.
    x: (B, S, *rest); groupby: (B, S) integer labels (concrete, not traced).
    Returns (x_grouped (G, num_per_group, *rest), groups (G,), example_ids (G,))."""
    if metadata is None:
        metadata = precompute_group_metadata(
            groupby, num_per_group, max_rows_per_block=max_rows_per_block)

    P = metadata["num_per_group"]
    G = metadata["num_groups"]
    N = metadata["num_rows"]

    B, S = int(x.shape[0]), int(x.shape[1])
    rest = tuple(int(d) for d in x.shape[2:])
    D = int(np.prod(rest)) if rest else 1
    # TODO(synk): rest=() gives D=1 (single-lane blocks) — correct but inefficient.
    x_flat = x.reshape(B * S, D)   # contiguous reshape only; features stay on lanes

    out = _gather_rows(x_flat, metadata["idx_pad"], metadata["contig"],
                       metadata["rows_per_block"])
    if int(out.shape[0]) != N:
        out = out[:N]              # only taken in the non-dividing fallback
    out = out.reshape((G, P) + rest)
    return out, metadata["groups"], metadata["example_ids"]


if __name__ == "__main__":
    def _reference(x, groupby, num_per_group):
        gb = np.asarray(groupby)
        idx_sorted, groups, ex = _grouping_metadata(gb, num_per_group)
        xf = np.asarray(x).reshape(int(x.shape[0]) * int(x.shape[1]), -1)
        ref = xf[idx_sorted].reshape((-1, num_per_group) + tuple(int(d) for d in x.shape[2:]))
        return ref, groups, ex

    key = jax.random.PRNGKey(0)

    # Case 1: scattered indices, single block, per-row DMA path.
    B, S, H = 2, 8, 32
    x1 = jax.random.normal(key, (B, S, H), dtype=jnp.float32)
    gb1 = np.array([[0, 0, 1, -1, 1, 2, 2, -1],
                    [5, -1, 3, 3, -1, 5, 7, 7]], dtype=np.int32)
    out1, g1, e1 = group_concat(x1, gb1, 2)
    out1 = jax.block_until_ready(out1)
    ref1, rg1, re1 = _reference(x1, gb1, 2)
    assert out1.shape == (6, 2, H), out1.shape
    assert np.array_equal(np.asarray(out1), ref1)
    assert np.array_equal(np.asarray(g1), rg1)
    assert np.array_equal(np.asarray(e1), re1)
    assert np.array_equal(np.asarray(g1), np.array([0, 1, 2, 3, 5, 7], np.int32))
    assert np.array_equal(np.asarray(e1), np.array([0, 0, 0, 1, 1, 1], np.int32))

    # Case 2: dense labels — multi-block grid, contiguous fast path (1 DMA/block).
    B, S, H = 2, 64, 128
    x2 = jax.random.normal(jax.random.fold_in(key, 1), (B, S, H), dtype=jnp.float32)
    gb2 = np.tile(np.arange(S, dtype=np.int32) // 4, (B, 1))
    out2, g2, e2 = group_concat(x2, gb2, 4, max_rows_per_block=32)
    out2 = jax.block_until_ready(out2)
    ref2, rg2, re2 = _reference(x2, gb2, 4)
    assert np.array_equal(np.asarray(out2), ref2)
    assert np.array_equal(np.asarray(g2), rg2)
    assert np.array_equal(np.asarray(e2), re2)

    # Case 3: N not divisible by the block size — padded tail block + final slice.
    B, S, H = 1, 24, 32
    x3 = jax.random.normal(jax.random.fold_in(key, 2), (B, S, H), dtype=jnp.float32)
    lab = np.full(S, -1, np.int32)
    lab[:20] = np.arange(20) // 2
    gb3 = lab[None, :]
    out3, g3, e3 = group_concat(x3, gb3, 2, max_rows_per_block=16)
    out3 = jax.block_until_ready(out3)
    ref3, rg3, re3 = _reference(x3, gb3, 2)
    assert np.array_equal(np.asarray(out3), ref3)
    assert np.array_equal(np.asarray(g3), rg3)
    assert np.array_equal(np.asarray(e3), re3)

    print("KERNEL_OK")
</pallas_src>

<mosaic_0001>
module attributes {stable_mosaic.version = 11 : i64} {
  func.func @kernel(%arg0: i32, %arg1: memref<12xi32, #tpu.memory_space<smem>>, %arg2: memref<1xi32, #tpu.memory_space<smem>>, %arg3: memref<16x32xf32, #tpu.memory_space<any>>, %arg4: memref<12x32xf32, #tpu.memory_space<vmem>>, %arg5: memref<8x!tpu.dma_semaphore, #tpu.memory_space<semaphore_mem>>) attributes {dimension_semantics = [#tpu.dimension_semantics<parallel>], iteration_bounds = array<i64: 1>, scalar_prefetch = 2 : i64, scratch_operands = 1 : i64, tpu.core_type = #tpu.core_type<tc>, window_params = [{}, {transform_indices = @transform_1, window_bounds = array<i64: 12, 32>}]} {
    %c12_i32 = arith.constant 12 : i32
    %0 = arith.muli %arg0, %c12_i32 : i32
    %1 = arith.index_cast %arg0 : i32 to index
    %2 = memref.load %arg2[%1] : memref<1xi32, #tpu.memory_space<smem>>
    %c0_i32 = arith.constant 0 : i32
    %3 = arith.cmpi ne, %2, %c0_i32 : i32
    %4 = arith.extui %3 : i1 to i32
    %c0_i32_0 = arith.constant 0 : i32
    %5 = arith.cmpi ne, %4, %c0_i32_0 : i32
    scf.if %5 {
      %11 = arith.index_cast %0 : i32 to index
      %12 = memref.load %arg1[%11] : memref<12xi32, #tpu.memory_space<smem>>
      %c0_i32_3 = arith.constant 0 : i32
      %c0_i32_4 = arith.constant 0 : i32
      %13 = tpu.memref_slice %arg3[%12, %c0_i32_4] : memref<16x32xf32, #tpu.memory_space<any>> -> memref<12x32xf32, #tpu.memory_space<any>>
      %14 = tpu.memref_slice %arg5[%c0_i32_3] : memref<8x!tpu.dma_semaphore, #tpu.memory_space<semaphore_mem>> -> memref<1x!tpu.dma_semaphore, #tpu.memory_space<semaphore_mem>>
      %15 = tpu.memref_squeeze %14 : memref<1x!tpu.dma_semaphore, #tpu.memory_space<semaphore_mem>> -> memref<!tpu.dma_semaphore, #tpu.memory_space<semaphore_mem>>
      tpu.enqueue_dma source(%13 : memref<12x32xf32, #tpu.memory_space<any>>) target(%arg4 : memref<12x32xf32, #tpu.memory_space<vmem>>) target_semaphore(%15 : memref<!tpu.dma_semaphore, #tpu.memory_space<semaphore_mem>>)
      %c0_i32_5 = arith.constant 0 : i32
      %c0_i32_6 = arith.constant 0 : i32
      %16 = tpu.memref_slice %arg3[%12, %c0_i32_6] : memref<16x32xf32, #tpu.memory_space<any>> -> memref<12x32xf32, #tpu.memory_space<any>>
      %17 = tpu.memref_slice %arg5[%c0_i32_5] : memref<8x!tpu.dma_semaphore, #tpu.memory_space<semaphore_mem>> -> memref<1x!tpu.dma_semaphore, #tpu.memory_space<semaphore_mem>>
      %18 = tpu.memref_squeeze %17 : memref<1x!tpu.dma_semaphore, #tpu.memory_space<semaphore_mem>> -> memref<!tpu.dma_semaphore, #tpu.memory_space<semaphore_mem>>
      tpu.wait_dma2 semaphore(%18 : memref<!tpu.dma_semaphore, #tpu.memory_space<semaphore_mem>>) src(%16 : memref<12x32xf32, #tpu.memory_space<any>>) dst(%arg4 : memref<12x32xf32, #tpu.memory_space<vmem>>)
    } else {
    }
    %6 = arith.index_cast %arg0 : i32 to index
    %7 = memref.load %arg2[%6] : memref<1xi32, #tpu.memory_space<smem>>
    %c0_i32_1 = arith.constant 0 : i32
    %8 = arith.cmpi eq, %7, %c0_i32_1 : i32
    %9 = arith.extui %8 : i1 to i32
    %c0_i32_2 = arith.constant 0 : i32
    %10 = arith.cmpi ne, %9, %c0_i32_2 : i32
    scf.if %10 {
      %c0_i32_3 = arith.constant 0 : i32
      %c8_i32 = arith.constant 8 : i32
      %11 = arith.addi %c0_i32_3, %c8_i32 : i32
      %c1_i32 = arith.constant 1 : i32
      scf.for %arg6 = %c0_i32_3 to %11 step %c1_i32  : i32 {
        %c1_i32_9 = arith.constant 1 : i32
        %13 = arith.muli %arg6, %c1_i32_9 : i32
        %c0_i32_10 = arith.constant 0 : i32
        %14 = arith.addi %c0_i32_10, %13 : i32
        %15 = arith.addi %0, %14 : i32
        %16 = arith.index_cast %15 : i32 to index
        %17 = memref.load %arg1[%16] : memref<12xi32, #tpu.memory_space<smem>>
        %c7_i32 = arith.constant 7 : i32
        %18 = arith.andi %14, %c7_i32 : i32
        %c0_i32_11 = arith.constant 0 : i32
        %19 = tpu.memref_slice %arg3[%17, %c0_i32_11] : memref<16x32xf32, #tpu.memory_space<any>> -> memref<1x32xf32, #tpu.memory_space<any>>
        %c0_i32_12 = arith.constant 0 : i32
        %20 = tpu.memref_slice %arg4[%14, %c0_i32_12] : memref<12x32xf32, #tpu.memory_space<vmem>> -> memref<1x32xf32, #tpu.memory_space<vmem>>
        %21 = tpu.memref_slice %arg5[%18] : memref<8x!tpu.dma_semaphore, #tpu.memory_space<semaphore_mem>> -> memref<1x!tpu.dma_semaphore, #tpu.memory_space<semaphore_mem>>
        %22 = tpu.memref_squeeze %21 : memref<1x!tpu.dma_semaphore, #tpu.memory_space<semaphore_mem>> -> memref<!tpu.dma_semaphore, #tpu.memory_space<semaphore_mem>>
        tpu.enqueue_dma source(%19 : memref<1x32xf32, #tpu.memory_space<any>>) target(%20 : memref<1x32xf32, #tpu.memory_space<vmem>>) target_semaphore(%22 : memref<!tpu.dma_semaphore, #tpu.memory_space<semaphore_mem>>)
      }
      %c8_i32_4 = arith.constant 8 : i32
      %c0_i32_5 = arith.constant 0 : i32
      %c12_i32_6 = arith.constant 12 : i32
      %12 = arith.addi %c0_i32_5, %c12_i32_6 : i32
      %c1_i32_7 = arith.constant 1 : i32
      scf.for %arg6 = %c0_i32_5 to %12 step %c1_i32_7  : i32 {
        %c1_i32_9 = arith.constant 1 : i32
        %13 = arith.muli %arg6, %c1_i32_9 : i32
        %c0_i32_10 = arith.constant 0 : i32
        %14 = arith.addi %c0_i32_10, %13 : i32
        %15 = arith.addi %0, %14 : i32
        %16 = arith.index_cast %15 : i32 to index
        %17 = memref.load %arg1[%16] : memref<12xi32, #tpu.memory_space<smem>>
        %c7_i32 = arith.constant 7 : i32
        %18 = arith.andi %14, %c7_i32 : i32
        %c0_i32_11 = arith.constant 0 : i32
        %19 = tpu.memref_slice %arg3[%17, %c0_i32_11] : memref<16x32xf32, #tpu.memory_space<any>> -> memref<1x32xf32, #tpu.memory_space<any>>
        %c0_i32_12 = arith.constant 0 : i32
        %20 = tpu.memref_slice %arg4[%14, %c0_i32_12] : memref<12x32xf32, #tpu.memory_space<vmem>> -> memref<1x32xf32, #tpu.memory_space<vmem>>
        %21 = tpu.memref_slice %arg5[%18] : memref<8x!tpu.dma_semaphore, #tpu.memory_space<semaphore_mem>> -> memref<1x!tpu.dma_semaphore, #tpu.memory_space<semaphore_mem>>
        %22 = tpu.memref_squeeze %21 : memref<1x!tpu.dma_semaphore, #tpu.memory_space<semaphore_mem>> -> memref<!tpu.dma_semaphore, #tpu.memory_space<semaphore_mem>>
        tpu.wait_dma2 semaphore(%22 : memref<!tpu.dma_semaphore, #tpu.memory_space<semaphore_mem>>) src(%19 : memref<1x32xf32, #tpu.memory_space<any>>) dst(%20 : memref<1x32xf32, #tpu.memory_space<vmem>>)
        %c8_i32_13 = arith.constant 8 : i32
        %23 = arith.addi %14, %c8_i32_13 : i32
        %c12_i32_14 = arith.constant 12 : i32
        %24 = arith.cmpi slt, %23, %c12_i32_14 : i32
        %25 = arith.extui %24 : i1 to i32
        %c0_i32_15 = arith.constant 0 : i32
        %26 = arith.cmpi ne, %25, %c0_i32_15 : i32
        scf.if %26 {
          %c8_i32_16 = arith.constant 8 : i32
          %27 = arith.addi %14, %c8_i32_16 : i32
          %28 = arith.addi %0, %27 : i32
          %29 = arith.index_cast %28 : i32 to index
          %30 = memref.load %arg1[%29] : memref<12xi32, #tpu.memory_space<smem>>
          %c7_i32_17 = arith.constant 7 : i32
          %31 = arith.andi %27, %c7_i32_17 : i32
          %c0_i32_18 = arith.constant 0 : i32
          %32 = tpu.memref_slice %arg3[%30, %c0_i32_18] : memref<16x32xf32, #tpu.memory_space<any>> -> memref<1x32xf32, #tpu.memory_space<any>>
          %c0_i32_19 = arith.constant 0 : i32
          %33 = tpu.memref_slice %arg4[%27, %c0_i32_19] : memref<12x32xf32, #tpu.memory_space<vmem>> -> memref<1x32xf32, #tpu.memory_space<vmem>>
          %34 = tpu.memref_slice %arg5[%31] : memref<8x!tpu.dma_semaphore, #tpu.memory_space<semaphore_mem>> -> memref<1x!tpu.dma_semaphore, #tpu.memory_space<semaphore_mem>>
          %35 = tpu.memref_squeeze %34 : memref<1x!tpu.dma_semaphore, #tpu.memory_space<semaphore_mem>> -> memref<!tpu.dma_semaphore, #tpu.memory_space<semaphore_mem>>
          tpu.enqueue_dma source(%32 : memref<1x32xf32, #tpu.memory_space<any>>) target(%33 : memref<1x32xf32, #tpu.memory_space<vmem>>) target_semaphore(%35 : memref<!tpu.dma_semaphore, #tpu.memory_space<semaphore_mem>>)
        } else {
        }
      }
      %c12_i32_8 = arith.constant 12 : i32
    } else {
    }
    return
  }
  func.func @transform_1(%arg0: i32, %arg1: memref<12xi32, #tpu.memory_space<smem>>, %arg2: memref<1xi32, #tpu.memory_space<smem>>) -> (i32, i32) {
    %c0_i32 = arith.constant 0 : i32
    %c0_i32_0 = arith.constant 0 : i32
    return %arg0, %c0_i32 : i32, i32
  }
}

</mosaic_0001>

<bundles_post_ra>
// kernel: tpu_custom_call.1
= control target key start
LH: loop header
LB: loop body
LE: loop exit
PB: predicated region body
PF: predicated region fallthrough
CT: control target
= control target key end

     0   :  { %s518_s0 = inlined_call_operand.vmem [shape: s32[12], index: 0, kind: input, shape index: {}]   ;;  %s519_s1 = inlined_call_operand.<no memory space> [shape: s32[1], index: 1, kind: input, shape index: {}]   ;;  %s520_s2 = inlined_call_operand.hbm [shape: f32[16,32], index: 2, kind: input, shape index: {}]   ;;  %s521_s3 = inlined_call_operand.hbm [shape: f32[12,32], index: 3, kind: output, shape index: {}]  }
   0x1   :  { %s8_s14 = sshll.u32 %s518_s0, 4  ;;  %12 = sst [smem:[#allocation5]] %s519_s1  ;;  %s9_s14 = int_to_ptr.vmem [resolvable:$true] %s8_s14 }
   0x2   :  { %s240_s17 = scalar_lea.vmem %s9_s14, 16  ;;  %p245_p1 = scmp.lt.s32.totalorder %s9_s14, %s9_s14 }
   0x3   :  { %p241_p0 = scmp.ne.s32.totalorder %s9_s14, %s240_s17  ;;  %p246_p2 = scmp.lt.s32.totalorder %s240_s17, %s240_s17 }
   0x5   :  { %p247_p3 = por %p246_p2, %p245_p1 }
   0x7   :  { %p248_p4 = pnand %p247_p3, %p241_p0 }
   0x9   :  { %251 = shalt.err (!%p248_p4)  }
   0xa   :  { %s380_s18 = smov [#allocation4]  }
   0xb   :  { %11 = dma.vmem_to_smem %s9_s14, 16, %s380_s18, [#allocation3] }
   0xc   :  { %362 = dma.done.wait [#allocation3], 16 }
   0xd   :  { %363 = vsyncadd [#allocation3], 4294967280 }
   0xe   :  { %14 = sfence }
   0xf   :  { %15 = vsyncpa [#allocation7], 0  ;;  %s410_s19 = sld [smem:[#allocation5]]  ;;  %s381_s1 = smov [#allocation6]  }
  0x10   :  { %s22_s0 = sld [smem:[#allocation4]]  ;;  %s32_s20 = sshll.u32 %s381_s1, 4  ;;  %s412_s20 = int_to_ptr.vmem [resolvable:$true] %s32_s20 }
  0x11   :  { %s423_s28 = scalar_lea.hbm %s520_s2, 256 }
  0x15   :  { %p218_p5 = scmp.ne.s32.totalorder %s410_s19, 0 }
  0x16   :  { %s198_s21 = sshll.u32 %s22_s0, 4 }
  0x17   :  { %s24_s24 = scalar_lea.hbm %s520_s2, %s198_s21 }
  0x18   :  { %s252_s25 = scalar_lea.hbm %s24_s24, 192  ;;  %p257_p9 = scmp.lt.u32.totalorder %s24_s24, %s520_s2 }
  0x19   :  { %p253_p6 = scmp.ne.s32.totalorder %s24_s24, %s252_s25  ;;  %p258_p10 = scmp.lt.u32.totalorder %s423_s28, %s252_s25 }
  0x1a   :  { %p260_p12 = scmp.lt.u32.totalorder %s252_s25, %s24_s24 }
  0x1b   :  { %p254_p7 = pnand %p253_p6, %p218_p5  ;;  %p259_p11 = por %p258_p10, %p257_p9 }
  0x1d   :  { %p255_p8 = pneg %p254_p7  ;;  %p261_p13 = por %p260_p12, %p259_p11 }
  0x1f   :  { %p262_p0 = pnand %p261_p13, %p255_p8 }
  0x21   :  { %265 = shalt.err (!%p262_p0)  }
  0x22   :  { %s266_s4 = scalar_lea.vmem %s412_s20, 192  ;;  %s434_s5 = scalar_lea.vmem %s412_s20, 256 }
  0x23   :  { %p267_p1 = scmp.ne.s32.totalorder %s412_s20, %s266_s4  ;;  %p522_p4 = scmp.lt.s32.totalorder %s412_s20, %s412_s20 }
  0x24   :  { %p274_p6 = scmp.lt.s32.totalorder %s434_s5, %s266_s4 }
  0x25   :  { %p268_p2 = pnand %p267_p1, %p218_p5 }
  0x26   :  { %p275_p7 = por %p274_p6, %p522_p4 }
  0x27   :  { %p269_p3 = pneg %p268_p2 }
  0x29   :  { %p276_p8 = pnand %p275_p7, %p269_p3 }
  0x2b   :  { %279 = shalt.err (!%p276_p8)  }
  0x2c   :  { %212 = dma.hbm_to_vmem [thread:$0]  (%p218_p5), %s24_s24, 192, %s412_s20, [#allocation2] }
  0x2d   :  { %365 = dma.done.wait (%p218_p5), [#allocation2], 192 }
  0x2e   :  { %367 = vsyncadd (%p218_p5), [#allocation2], 4294967104  ;;  %s39_s6 = sld [smem:[#allocation5]] }
  0x34   :  { %p199_p9 = scmp.ne.s32.totalorder %s39_s6, 0 }
  0x35   :  { %s449_s7 = smov (!%p199_p9), 0  }
  0x36   :  { %43 = sbr.rel (%p199_p9) target bundleno = 146 (0x92), region = 13 }
  0x3d LB: > { %s51_s8 = sld [smem:[#allocation4 + %s374_s7]]  ;;  %s52_s9 = sand.u32 7, %s374_s7  ;;  %s374_s7 = sphi %s449_s7, %s49_s7  }
  0x3e   : > { %s55_s10 = scalar_lea.vmem [#allocation6], %s374_s7  ;;  %s56_s16 = scalar_lea.sflag [#allocation2], %s52_s9 }
  0x3f   : > { %s64_s11 = sshll.u32 %s55_s10, 4  ;;  %s65_s11 = int_to_ptr.vmem [resolvable:$true] %s64_s11 }
  0x43   : > { %s200_s12 = sshll.u32 %s51_s8, 4 }
  0x44   : > { %s54_s15 = scalar_lea.hbm %s520_s2, %s200_s12 }
  0x45   : > { %s280_s17 = scalar_lea.hbm %s54_s15, 16  ;;  %p283_p10 = scmp.lt.u32.totalorder %s54_s15, %s520_s2 }
  0x46   : > { %p281_p5 = scmp.ne.s32.totalorder %s54_s15, %s280_s17  ;;  %p284_p11 = scmp.lt.u32.totalorder %s423_s28, %s280_s17 }
  0x47   : > { %p286_p13 = scmp.lt.u32.totalorder %s280_s17, %s54_s15 }
  0x48   : > { %p285_p12 = por %p284_p11, %p283_p10 }
  0x4a   : > { %p287_p0 = por %p286_p13, %p285_p12 }
  0x4c   : > { %p288_p1 = pnand %p287_p0, %p281_p5 }
  0x4e   : > { %291 = shalt.err (!%p288_p1)  }
  0x4f   : > { %s292_s0 = scalar_lea.vmem %s65_s11, 16  ;;  %p297_p3 = scmp.lt.s32.totalorder %s65_s11, %s412_s20 }
  0x50   : > { %p293_p2 = scmp.ne.s32.totalorder %s65_s11, %s292_s0  ;;  %p298_p6 = scmp.lt.s32.totalorder %s434_s5, %s292_s0 }
  0x52   : > { %p299_p7 = por %p298_p6, %p297_p3 }
  0x54   : > { %p300_p8 = pnand %p299_p7, %p293_p2 }
  0x56   : > { %303 = shalt.err (!%p300_p8)  }
  0x57   : > { %67 = dma.hbm_to_vmem [thread:$0]  %s54_s15, 16, %s65_s11, %s56_s16 }
  0x58   : > { %s49_s7 = sadd.s32 1, %s374_s7  }
  0x59   : > { %p46_p9 = scmp.ge.s32.totalorder %s49_s7, 8  }
  0x5a   :  { %s463_s1 = smov (%p46_p9), 0  }
  0x5b   :  { %48 = sbr.rel (!%p46_p9) target bundleno = 61 (0x3d), region = 73 }
  0x62 LB: > { %s76_s21 = sand.u32 7, %s378_s1  ;;  %s378_s1 = sphi %s463_s1, %s73_s1  }
  0x63   : > { %s77_s22 = scalar_lea.sflag [#allocation2], %s76_s21 }
  0x64   : > { %368 = dma.done.wait %s77_s22, 16 }
  0x65   : > { %369 = vsyncadd %s77_s22, 4294967280  ;;  %s470_s23 = sadd.s32 8, %s378_s1  ;;  %s184_s26 = scalar_lea.vmem [#allocation6], %s378_s1 }
  0x66   : > { %p219_p5 = scmp.lt.s32.totalorder %s470_s23, 12  ;;  %s185_s27 = scalar_lea.vmem %s184_s26, 8 [#allocation6] }
  0x67   : > { %s88_s30 = sand.u32 7, %s470_s23  ;;  %s100_s4 = sshll.u32 %s185_s27, 4  ;;  %s101_s4 = int_to_ptr.vmem [resolvable:$true] %s100_s4 }
  0x68   : > { %s215_s24 = scalar_select %p219_p5, [#allocation4], [#allocation16] }
  0x69   : > { %s216_s25 = scalar_select %p219_p5, %s470_s23, 0 }
  0x6a   : > { %s92_s10 = scalar_lea.sflag [#allocation2], %s88_s30 }
  0x6b   : > { %s87_s29 = sld [smem:[%s215_s24 + %s216_s25]] }
  0x71   : > { %s202_s6 = sshll.u32 %s87_s29, 4 }
  0x72   : > { %s90_s9 = scalar_lea.hbm %s520_s2, %s202_s6 }
  0x73   : > { %s304_s11 = scalar_lea.hbm %s90_s9, 16  ;;  %p309_p13 = scmp.lt.u32.totalorder %s90_s9, %s520_s2 }
  0x74   : > { %p305_p10 = scmp.ne.s32.totalorder %s90_s9, %s304_s11  ;;  %p310_p0 = scmp.lt.u32.totalorder %s423_s28, %s304_s11 }
  0x75   : > { %p312_p2 = scmp.lt.u32.totalorder %s304_s11, %s90_s9 }
  0x76   : > { %p306_p11 = pnand %p305_p10, %p219_p5  ;;  %p311_p1 = por %p310_p0, %p309_p13 }
  0x78   : > { %p307_p12 = pneg %p306_p11  ;;  %p313_p3 = por %p312_p2, %p311_p1 }
  0x7a   : > { %p314_p6 = pnand %p313_p3, %p307_p12 }
  0x7c   : > { %317 = shalt.err (!%p314_p6)  }
  0x7d   : > { %s318_s14 = scalar_lea.vmem %s101_s4, 16  ;;  %p325_p10 = scmp.lt.s32.totalorder %s101_s4, %s412_s20 }
  0x7e   : > { %p319_p7 = scmp.ne.s32.totalorder %s101_s4, %s318_s14  ;;  %p326_p11 = scmp.lt.s32.totalorder %s434_s5, %s318_s14 }
  0x80   : > { %p320_p8 = pnand %p319_p7, %p219_p5  ;;  %p327_p4 = por %p326_p11, %p325_p10 }
  0x82   : > { %p321_p9 = pneg %p320_p8 }
  0x84   : > { %p328_p0 = pnand %p327_p4, %p321_p9 }
  0x86   : > { %331 = shalt.err (!%p328_p0)  }
  0x87   : > { %217 = dma.hbm_to_vmem [thread:$0]  (%p219_p5), %s90_s9, 16, %s101_s4, %s92_s10 }
  0x88   : > { %s73_s1 = sadd.s32 1, %s378_s1  }
  0x89   : > { %p70_p12 = scmp.ge.s32.totalorder %s73_s1, 12  }
  0x8b   :  { %72 = sbr.rel (!%p70_p12) target bundleno = 98 (0x62), region = 84 }
  0x92 PF:  { %p333_p13 = scmp.ne.s32.totalorder %s412_s20, %s434_s5  ;;  %p338_p1 = scmp.lt.s32.totalorder %s434_s5, %s434_s5 }
  0x93   :  { %p523_p4 = scmp.lt.s32.totalorder %s412_s20, %s412_s20 }
  0x95   :  { %p339_p2 = por %p338_p1, %p523_p4 }
  0x97   :  { %p340_p3 = pnand %p339_p2, %p333_p13 }
  0x99   :  { %343 = shalt.err (!%p340_p3)
}
  0x9a   :  { %s344_s17 = scalar_lea.hbm %s521_s3, 256 }
  0x9b   :  { %p345_p5 = scmp.ne.s32.totalorder %s521_s3, %s344_s17  ;;  %p348_p6 = scmp.lt.u32.totalorder %s344_s17, %s521_s3 }
  0x9d   :  { %p350_p7 = pnand %p348_p6, %p345_p5 }
  0x9f   :  { %353 = shalt.err (!%p350_p7)
}
  0xa0   :  { %s382_s0 = smov 128   ;;  %s383_s5 = smov 8  }
  0xa1   :  { %115 = dma.vmem_to_hbm [thread:$0]  %s412_s20, 256, %s521_s3, [#allocation7], %s382_s0, %s382_s0, %s383_s5  }
  0xa2   :  { %370 = dma.done.wait [#allocation7], 256  }
  0xa3   :  { %371 = vsyncadd [#allocation7], 4294967040 }
  0xa4   :  { %119 = vsyncpa [#allocation7], 1 }
  0xa5   :  { %120 = vsyncmov [#allocation2] }
  0xa8   :  { %s121_s22 = vpop.sfrf %120 }
  0xa9   :  { %p203_p8 = scmp.ne.s32.totalorder %s121_s22, 0 }
  0xab   :  { %125 = shalt.err (%p203_p8)  }
  0xac   :  { %127 = vsyncmov [#allocation2 + $0x1] }
  0xaf   :  { %s128_s23 = vpop.sfrf %127 }
  0xb0   :  { %p204_p9 = scmp.ne.s32.totalorder %s128_s23, 0 }
  0xb2   :  { %132 = shalt.err (%p204_p9)  }
  0xb3   :  { %134 = vsyncmov [#allocation2 + $0x2] }
  0xb6   :  { %s135_s24 = vpop.sfrf %134 }
  0xb7   :  { %p205_p10 = scmp.ne.s32.totalorder %s135_s24, 0 }
  0xb9   :  { %139 = shalt.err (%p205_p10)  }
  0xba   :  { %141 = vsyncmov [#allocation2 + $0x3] }
  0xbd   :  { %s142_s25 = vpop.sfrf %141 }
  0xbe   :  { %p206_p11 = scmp.ne.s32.totalorder %s142_s25, 0 }
  0xc0   :  { %146 = shalt.err (%p206_p11)  }
  0xc1   :  { %148 = vsyncmov [#allocation2 + $0x4] }
  0xc4   :  { %s149_s3 = vpop.sfrf %148 }
  0xc5   :  { %p207_p0 = scmp.ne.s32.totalorder %s149_s3, 0 }
  0xc7   :  { %153 = shalt.err (%p207_p0)  }
  0xc8   :  { %155 = vsyncmov [#allocation2 + $0x5] }
  0xcb   :  { %s156_s20 = vpop.sfrf %155 }
  0xcc   :  { %p208_p12 = scmp.ne.s32.totalorder %s156_s20, 0 }
  0xce   :  { %160 = shalt.err (%p208_p12)  }
  0xcf   :  { %162 = vsyncmov [#allocation2 + $0x6] }
  0xd2   :  { %s163_s26 = vpop.sfrf %162 }
  0xd3   :  { %p209_p13 = scmp.ne.s32.totalorder %s163_s26, 0 }
  0xd5   :  { %167 = shalt.err (%p209_p13)  }
  0xd6   :  { %169 = vsyncmov [#allocation2 + $0x7] }
  0xd9   :  { %s170_s27 = vpop.sfrf %169 }
  0xda   :  { %p210_p1 = scmp.ne.s32.totalorder %s170_s27, 0 }
  0xdc   :  { %174 = shalt.err (%p210_p1)  }

</bundles_post_ra>
